<compile_context>
chip_gen: v7x
topology: tpu7x:2x2x1
jax: 0.10.0
libtpu: 0.0.40
codegen_flags: <defaults>
</compile_context>

<pallas_src>
import functools

import jax
import jax.numpy as jnp
import numpy as np
from jax.experimental import pallas as pl
from jax.experimental.pallas import tpu as pltpu


def _round_up(x, m):
    return (x + m - 1) // m * m


# ----------------------------------------------------------------------------
# Pallas kernel: fused spatial conv (block-diag matmul) + folded BN + swish
#                + per-stride unbiased log-variance (two-pass, MXU reductions).
# ----------------------------------------------------------------------------
def _fbcnet_kernel(x_ref, w_ref, b_ref, seg_ref, segT_ref, lv_ref, *, seg_len):
    """One grid step: `bt` trials, full time axis.

    x_ref   : (1, C, bt*T)       bf16   input page (trial-major time on lanes)
    w_ref   : (Cout, C)          bf16   block-diag conv weight, BN scale folded
    b_ref   : (Cout, 1)          f32    conv bias + BN shift folded
    seg_ref : (bt*T, L_pad)      f32    0/1 segment-selection matrix
    segT_ref: (L_pad, bt*T)      f32    its transpose (host-built, no XLU work)
    lv_ref  : (1, Cout, L_pad)   f32    per-(trial,stride) log-variance slab
    """
    x = x_ref[0]                                               # (C, bt*T)
    # Single lane-dense MXU contraction for the whole batch tile.
    y = jnp.dot(w_ref[...], x, preferred_element_type=jnp.float32) + b_ref[...]
    y = y * jax.nn.sigmoid(y)                                  # swish, f32

    seg = seg_ref[...]
    inv_ts = 1.0 / seg_len
    inv_tsm1 = 1.0 / (seg_len - 1)

    # Two-pass unbiased variance per (trial, stride) segment, all on the MXU.
    ssum = jnp.dot(y, seg, preferred_element_type=jnp.float32)       # (Cout, L_pad)
    mean = ssum * inv_ts
    mean_full = jnp.dot(mean, segT_ref[...],
                        preferred_element_type=jnp.float32)          # (Cout, bt*T)
    d = y - mean_full
    var = jnp.dot(d * d, seg, preferred_element_type=jnp.float32) * inv_tsm1

    # Lane-dense store; padding columns carry log(1e-6) and are sliced off
    # in the wrapper.
    lv_ref[0] = jnp.log(jnp.clip(var, 1e-6, 1e6))


def _pick_batch_tile(N, C, T, Cout, S, budget_bytes=24 * 2**20):
    """Largest bt (multiple of 8) fitting a conservative VMEM budget, while
    keeping >= 2 grid steps when the batch allows (v7x has 2 TensorCores;
    extra steps are near-free on 1-TC v5e/v6e at these block sizes)."""
    def est(bt):
        L_pad = _round_up(bt * S, 128)
        return (2 * C * bt * T * 2            # double-buffered bf16 x page
                + 2 * bt * T * L_pad * 4      # seg + segT (resident, f32)
                + 6 * Cout * bt * T * 4       # f32 activation temporaries
                + 2 * Cout * L_pad * 4)       # double-buffered output slab
    cap = _round_up(max((N + 1) // 2, 1), 8)
    bt = 8
    while bt + 8 <= cap and est(bt + 8) <= budget_bytes:
        bt += 8
    return bt


def fbcnet_forward(x, w_full, bias, bn_scale, bn_shift, wl, bl, *,
                   stride_factor, batch_tile=None):
    """x: (N, C, T) float32.  Returns (fea (N, F), pred (N, nClass))."""
    N, C, T = x.shape
    Cout = w_full.shape[0]

    if T % stride_factor != 0:
        raise ValueError("nTime must be divisible by strideFactor")
    Ts = T // stride_factor
    if Ts <= 1:
        raise ValueError("need >= 2 samples per stride for unbiased variance")
    S = stride_factor
    F = Cout * S

    bt = batch_tile if batch_tile is not None else _pick_batch_tile(N, C, T, Cout, S)
    bt = _round_up(max(bt, 1), 8)
    N_pad = _round_up(N, bt)
    nb = N_pad // bt
    L = bt * S
    L_pad = _round_up(L, 128)

    # Fold conv bias + eval-mode BatchNorm into a single weight and shift.
    # TODO(synk): training-mode batch statistics are not replicated; eval-mode
    # running stats are folded instead.
    w_eff = (bn_scale * w_full).astype(jnp.bfloat16)             # (Cout, C)
    b_eff = (bn_scale * bias + bn_shift).astype(jnp.float32)     # (Cout, 1)

    # Constant 0/1 segment-selection matrices (per grid-step layout).
    seg_np = np.zeros((bt * T, L_pad), np.float32)
    for j in range(bt):
        for s in range(S):
            seg_np[j * T + s * Ts: j * T + (s + 1) * Ts, j * S + s] = 1.0
    seg = jnp.asarray(seg_np)
    segT = jnp.asarray(np.ascontiguousarray(seg_np.T))

    # Lay x out as (nb, C, bt*T) bf16 pages (halves input DMA bytes).
    xb = x.astype(jnp.bfloat16)
    if N_pad != N:
        # TODO(synk): for very large N a ragged last tile would avoid this
        # materialized pad; bt is chosen to divide N in the common case.
        xb = jnp.pad(xb, ((0, N_pad - N), (0, 0), (0, 0)))
    x_pages = xb.reshape(nb, bt, C, T).transpose(0, 2, 1, 3).reshape(nb, C, bt * T)

    # VMEM budget (same formula as tile selection), clamped so it is valid on
    # v7x's 64 MiB physical VMEM as well as v5e/v6e's 128 MiB.
    est = (2 * C * bt * T * 2
           + 2 * bt * T * L_pad * 4
           + 6 * Cout * bt * T * 4
           + 2 * Cout * L_pad * 4
           + Cout * C * 2 + Cout * 4)
    vmem_limit = int(min(max(2 * est, 32 * 2**20), 64 * 2**20))

    kernel = functools.partial(_fbcnet_kernel, seg_len=Ts)
    lv_pages = pl.pallas_call(
        kernel,
        out_shape=jax.ShapeDtypeStruct((nb, Cout, L_pad), jnp.float32),
        grid=(nb,),
        in_specs=[
            pl.BlockSpec((1, C, bt * T), lambda i: (i, 0, 0)),   # x page
            pl.BlockSpec((Cout, C), lambda i: (0, 0)),           # fused weight
            pl.BlockSpec((Cout, 1), lambda i: (0, 0)),           # fused shift
            pl.BlockSpec((bt * T, L_pad), lambda i: (0, 0)),     # seg
            pl.BlockSpec((L_pad, bt * T), lambda i: (0, 0)),     # seg^T
        ],
        out_specs=pl.BlockSpec((1, Cout, L_pad), lambda i: (i, 0, 0)),
        compiler_params=pltpu.CompilerParams(
            dimension_semantics=("parallel",),     # megacore over batch pages
            vmem_limit_bytes=vmem_limit),
    )(x_pages, w_eff, b_eff, seg, segT)

    # Tiny (N, F)-sized permutation + the constrained Linear in plain XLA.
    lv = lv_pages[:, :, :L].reshape(nb, Cout, bt, S)
    fea = lv.transpose(0, 2, 1, 3).reshape(N_pad, F)[:N]         # (N, Cout*S)
    pred = fea @ wl.T + bl
    return fea, pred


# ----------------------------------------------------------------------------
# Parameter construction (deterministic) + weight-norm constraints
# ----------------------------------------------------------------------------
def _renorm_rows(w, max_norm):
    """torch.renorm(w, p=2, dim=0, maxnorm=max_norm): per-row L2 max-norm."""
    flat = w.reshape(w.shape[0], -1)
    norm = jnp.sqrt(jnp.sum(flat * flat, axis=1, keepdims=True))
    scale = jnp.where(norm > max_norm, max_norm / norm, 1.0)
    return (flat * scale).reshape(w.shape)


def make_params(key, *, nChan, nBands, m, nClass, stride_factor):
    Cg = nChan // nBands          # channels per band (== conv kernel height)
    Cout = m * nBands
    F = Cout * stride_factor
    k = jax.random.split(key, 4)

    # Conv2dWithConstraint weight (m*nBands, 1, Cg, 1) stored as (nBands, m, Cg)
    w_conv = 0.3 * jax.random.normal(k[0], (nBands, m, Cg), jnp.float32)
    w_conv = _renorm_rows(w_conv.reshape(Cout, Cg), max_norm=2.0).reshape(
        nBands, m, Cg)
    b_conv = 0.1 * jax.random.normal(k[1], (Cout,), jnp.float32)

    # Fold the grouped conv into a block-diagonal (Cout, nChan) matrix.
    w_full = jnp.zeros((Cout, nChan), jnp.float32)
    for b in range(nBands):
        w_full = w_full.at[b * m:(b + 1) * m, b * Cg:(b + 1) * Cg].set(
            w_conv[b])

    # BatchNorm2d (eval mode, default init: gamma=1, beta=0, mean=0, var=1).
    eps = 1e-5
    gamma = jnp.ones((Cout,), jnp.float32)
    beta = jnp.zeros((Cout,), jnp.float32)
    run_mean = jnp.zeros((Cout,), jnp.float32)
    run_var = jnp.ones((Cout,), jnp.float32)
    bn_scale = gamma / jnp.sqrt(run_var + eps)
    bn_shift = beta - run_mean * bn_scale

    # LinearWithConstraint (F -> nClass), max_norm = 0.5 on rows.
    wl = 0.2 * jax.random.normal(k[2], (nClass, F), jnp.float32)
    wl = _renorm_rows(wl, max_norm=0.5)
    bl = 0.05 * jax.random.normal(k[3], (nClass,), jnp.float32)

    return dict(
        w_full=w_full,
        bias=b_conv.reshape(Cout, 1),
        bn_scale=bn_scale.reshape(Cout, 1),
        bn_shift=bn_shift.reshape(Cout, 1),
        wl=wl,
        bl=bl.reshape(1, nClass),
    )


# ----------------------------------------------------------------------------
# Pure-JAX reference of the same forward (for verification).
# Matmul operands are rounded to bf16 exactly like the kernel path.
# ----------------------------------------------------------------------------
def reference_forward(x, p, *, stride_factor):
    N, C, T = x.shape
    Cout = p['w_full'].shape[0]
    Ts = T // stride_factor
    w_eff = (p['bn_scale'] * p['w_full']).astype(jnp.bfloat16).astype(
        jnp.float32)
    b_eff = p['bn_scale'] * p['bias'] + p['bn_shift']
    xb = x.astype(jnp.bfloat16).astype(jnp.float32)
    y = jnp.einsum('oc,nct->not', w_eff, xb) + b_eff[None]
    y = y * jax.nn.sigmoid(y)
    yr = y.reshape(N, Cout, stride_factor, Ts)
    var = jnp.var(yr, axis=-1, ddof=1)
    fea = jnp.log(jnp.clip(var, 1e-6, 1e6)).reshape(N, -1)
    pred = fea @ p['wl'].T + p['bl']
    return fea, pred


# ----------------------------------------------------------------------------
if __name__ == "__main__":
    # Small FBCNet config (data_name='synthetic' -> no time trimming).
    nChan, nBands, m, strideFactor, nClass = 4, 2, 8, 3, 2
    N, T = 16, 48                     # nTime divisible by strideFactor

    key = jax.random.PRNGKey(0)
    kx, kp = jax.random.split(key)
    x = jax.random.normal(kx, (N, nChan, T), jnp.float32)

    params = make_params(kp, nChan=nChan, nBands=nBands, m=m,
                         nClass=nClass, stride_factor=strideFactor)

    fea, pred = fbcnet_forward(
        x, params['w_full'], params['bias'], params['bn_scale'],
        params['bn_shift'], params['wl'], params['bl'],
        stride_factor=strideFactor)
    jax.block_until_ready((fea, pred))

    fea_ref, pred_ref = reference_forward(x, params, stride_factor=strideFactor)
    np.testing.assert_allclose(np.asarray(fea), np.asarray(fea_ref),
                               rtol=1e-3, atol=1e-3)
    np.testing.assert_allclose(np.asarray(pred), np.asarray(pred_ref),
                               rtol=1e-3, atol=1e-3)

    assert fea.shape == (N, m * nBands * strideFactor)
    assert pred.shape == (N, nClass)
    print("KERNEL_OK")
</pallas_src>

<mosaic_0001>
module attributes {stable_mosaic.version = 11 : i64} {
  func.func @_fbcnet_kernel(%arg0: i32, %arg1: memref<1x4x384xbf16, #tpu.memory_space<vmem>>, %arg2: memref<16x4xbf16, #tpu.memory_space<vmem>>, %arg3: memref<16x1xf32, #tpu.memory_space<vmem>>, %arg4: memref<384x128xf32, #tpu.memory_space<vmem>>, %arg5: memref<128x384xf32, #tpu.memory_space<vmem>>, %arg6: memref<1x16x128xf32, #tpu.memory_space<vmem>>) attributes {dimension_semantics = [#tpu.dimension_semantics<parallel>], iteration_bounds = array<i64: 2>, scalar_prefetch = 0 : i64, scratch_operands = 0 : i64, tpu.core_type = #tpu.core_type<tc>, window_params = [{transform_indices = @transform_0, window_bounds = array<i64: 1, 4, 384>}, {pipeline_mode = #tpu.pipeline_mode<synchronous>, transform_indices = @transform_1, window_bounds = array<i64: 16, 4>}, {pipeline_mode = #tpu.pipeline_mode<synchronous>, transform_indices = @transform_2, window_bounds = array<i64: 16, 1>}, {pipeline_mode = #tpu.pipeline_mode<synchronous>, transform_indices = @transform_3, window_bounds = array<i64: 384, 128>}, {pipeline_mode = #tpu.pipeline_mode<synchronous>, transform_indices = @transform_4, window_bounds = array<i64: 128, 384>}, {transform_indices = @transform_5, window_bounds = array<i64: 1, 16, 128>}]} {
    %c0 = arith.constant 0 : index
    %c0_0 = arith.constant 0 : index
    %c0_1 = arith.constant 0 : index
    %0 = vector.load %arg1[%c0, %c0_0, %c0_1] : memref<1x4x384xbf16, #tpu.memory_space<vmem>>, vector<1x4x384xbf16>
    %1 = vector.shape_cast %0 : vector<1x4x384xbf16> to vector<4x384xbf16>
    %c0_2 = arith.constant 0 : index
    %c0_3 = arith.constant 0 : index
    %2 = vector.load %arg2[%c0_2, %c0_3] : memref<16x4xbf16, #tpu.memory_space<vmem>>, vector<16x4xbf16>
    %cst = arith.constant dense<0.000000e+00> : vector<16x384xf32>
    %3 = tpu.matmul %2, %1, %cst {dimension_numbers = #tpu.dot_dimension_numbers<[1], [0], [0], [1], [0, 0, 1, 1], [], []>} : vector<16x4xbf16>, vector<4x384xbf16>, vector<16x384xf32> -> vector<16x384xf32>
    %c0_4 = arith.constant 0 : index
    %c0_5 = arith.constant 0 : index
    %4 = vector.load %arg3[%c0_4, %c0_5] : memref<16x1xf32, #tpu.memory_space<vmem>>, vector<16x1xf32>
    %5 = vector.broadcast %4 : vector<16x1xf32> to vector<16x384xf32>
    %6 = arith.addf %3, %5 : vector<16x384xf32>
    %7 = arith.negf %6 : vector<16x384xf32>
    %8 = math.exp %7 : vector<16x384xf32>
    %cst_6 = arith.constant 1.000000e+00 : f32
    %9 = vector.broadcast %cst_6 : f32 to vector<16x384xf32>
    %10 = arith.addf %9, %8 : vector<16x384xf32>
    %11 = arith.divf %9, %10 : vector<16x384xf32>
    %12 = arith.mulf %6, %11 : vector<16x384xf32>
    %c0_7 = arith.constant 0 : index
    %c0_8 = arith.constant 0 : index
    %13 = vector.load %arg4[%c0_7, %c0_8] : memref<384x128xf32, #tpu.memory_space<vmem>>, vector<384x128xf32>
    %cst_9 = arith.constant dense<0.000000e+00> : vector<16x128xf32>
    %14 = tpu.matmul %12, %13, %cst_9 {dimension_numbers = #tpu.dot_dimension_numbers<[1], [0], [0], [1], [0, 0, 1, 1], [], []>} : vector<16x384xf32>, vector<384x128xf32>, vector<16x128xf32> -> vector<16x128xf32>
    %cst_10 = arith.constant 6.250000e-02 : f32
    %15 = vector.broadcast %cst_10 : f32 to vector<16x128xf32>
    %16 = arith.mulf %14, %15 : vector<16x128xf32>
    %c0_11 = arith.constant 0 : index
    %c0_12 = arith.constant 0 : index
    %17 = vector.load %arg5[%c0_11, %c0_12] : memref<128x384xf32, #tpu.memory_space<vmem>>, vector<128x384xf32>
    %cst_13 = arith.constant dense<0.000000e+00> : vector<16x384xf32>
    %18 = tpu.matmul %16, %17, %cst_13 {dimension_numbers = #tpu.dot_dimension_numbers<[1], [0], [0], [1], [0, 0, 1, 1], [], []>} : vector<16x128xf32>, vector<128x384xf32>, vector<16x384xf32> -> vector<16x384xf32>
    %19 = arith.subf %12, %18 : vector<16x384xf32>
    %20 = arith.mulf %19, %19 : vector<16x384xf32>
    %cst_14 = arith.constant dense<0.000000e+00> : vector<16x128xf32>
    %21 = tpu.matmul %20, %13, %cst_14 {dimension_numbers = #tpu.dot_dimension_numbers<[1], [0], [0], [1], [0, 0, 1, 1], [], []>} : vector<16x384xf32>, vector<384x128xf32>, vector<16x128xf32> -> vector<16x128xf32>
    %cst_15 = arith.constant 0.0666666701 : f32
    %22 = vector.broadcast %cst_15 : f32 to vector<16x128xf32>
    %23 = arith.mulf %21, %22 : vector<16x128xf32>
    %cst_16 = arith.constant 9.99999997E-7 : f32
    %cst_17 = arith.constant 1.000000e+06 : f32
    %24 = vector.broadcast %cst_16 : f32 to vector<16x128xf32>
    %25 = arith.maximumf %24, %23 : vector<16x128xf32>
    %26 = vector.broadcast %cst_17 : f32 to vector<16x128xf32>
    %27 = arith.minimumf %26, %25 : vector<16x128xf32>
    %28 = math.log %27 : vector<16x128xf32>
    %c0_18 = arith.constant 0 : index
    %c0_19 = arith.constant 0 : index
    %c0_20 = arith.constant 0 : index
    %29 = vector.load %arg6[%c0_18, %c0_19, %c0_20] : memref<1x16x128xf32, #tpu.memory_space<vmem>>, vector<1x16x128xf32>
    %30 = vector.shape_cast %29 : vector<1x16x128xf32> to vector<16x128xf32>
    %31 = vector.shape_cast %28 : vector<16x128xf32> to vector<1x16x128xf32>
    tpu.vector_store %arg6[%c0_18, %c0_19, %c0_20], %31 {strides = array<i32>} : memref<1x16x128xf32, #tpu.memory_space<vmem>>, vector<1x16x128xf32>,
    return
  }
  func.func @transform_0(%arg0: i32) -> (i32, i32, i32) {
    %c0_i32 = arith.constant 0 : i32
    %c0_i32_0 = arith.constant 0 : i32
    %c0_i32_1 = arith.constant 0 : i32
    return %arg0, %c0_i32, %c0_i32_0 : i32, i32, i32
  }
  func.func @transform_1(%arg0: i32) -> (i32, i32) {
    %c0_i32 = arith.constant 0 : i32
    %c0_i32_0 = arith.constant 0 : i32
    %c0_i32_1 = arith.constant 0 : i32
    return %c0_i32, %c0_i32_0 : i32, i32
  }
  func.func @transform_2(%arg0: i32) -> (i32, i32) {
    %c0_i32 = arith.constant 0 : i32
    %c0_i32_0 = arith.constant 0 : i32
    %c0_i32_1 = arith.constant 0 : i32
    return %c0_i32, %c0_i32_0 : i32, i32
  }
  func.func @transform_3(%arg0: i32) -> (i32, i32) {
    %c0_i32 = arith.constant 0 : i32
    %c0_i32_0 = arith.constant 0 : i32
    %c0_i32_1 = arith.constant 0 : i32
    return %c0_i32, %c0_i32_0 : i32, i32
  }
  func.func @transform_4(%arg0: i32) -> (i32, i32) {
    %c0_i32 = arith.constant 0 : i32
    %c0_i32_0 = arith.constant 0 : i32
    %c0_i32_1 = arith.constant 0 : i32
    return %c0_i32, %c0_i32_0 : i32, i32
  }
  func.func @transform_5(%arg0: i32) -> (i32, i32, i32) {
    %c0_i32 = arith.constant 0 : i32
    %c0_i32_0 = arith.constant 0 : i32
    %c0_i32_1 = arith.constant 0 : i32
    return %arg0, %c0_i32, %c0_i32_0 : i32, i32, i32
  }
}

</mosaic_0001>

<bundles_post_ra>
// kernel: tpu_custom_call.1
= control target key start
LH: loop header
LB: loop body
LE: loop exit
PB: predicated region body
PF: predicated region fallthrough
CT: control target
= control target key end

     0   :  { %10 = vsyncpa [#allocation3], 0  ;;  %s2169_s0 = inlined_call_operand.vmem [shape: bf16[2,4,384], index: 0, kind: input, shape index: {}]   ;;  %s2170_s1 = inlined_call_operand.vmem [shape: bf16[16,4], index: 1, kind: input, shape index: {}]   ;;  %s2171_s2 = inlined_call_operand.vmem [shape: f32[16,1], index: 2, kind: input, shape index: {}]   ;;  %s2172_s3 = inlined_call_operand.hbm [shape: f32[384,128], index: 3, kind: input, shape index: {}]   ;;  %s2173_s4 = inlined_call_operand.hbm [shape: f32[128,384], index: 4, kind: input, shape index: {}]   ;;  %s2174_s5 = inlined_call_operand.hbm [shape: f32[2,16,128], index: 5, kind: output, shape index: {}]  }
   0x1   :  { %11 = vsyncpa [#allocation6], 0 }
   0x2   :  { %12 = vsyncpa [#allocation4], 0 }
   0x3   :  { %14 = vsyncpa [#allocation4 + $0x1], 0  ;;  %s1837_s18 = smov 0   ;;  %s1839_s19 = smov 0  }
   0x4   :  { %s1841_s20 = smov 0   ;;  %s1843_s21 = smov 0  }
   0x5 LB: > { %s1858_s22 = sadd.s32 4294967295, %s1792_s21   ;;  %s1103_s23 = sadd.s32 4294967294, %s1792_s21   ;;  %s1792_s21 = sphi %s1843_s21, %s2192_s21   ;;  %s1788_s20 = sphi %s1841_s20, %s2191_s20   ;;  %s1784_s19 = sphi %s1839_s19, %s2190_s19   ;;  %s1780_s18 = sphi %s1837_s18, %s2189_s18  }
   0x6   : > { %s1862_s24 = sadd.s32 1, %s1792_s21   ;;  %s137_s25 = sadd.s32 1, %s1788_s20 }
   0x7   : > { %s134_s26 = ssub.s32 %s1792_s21, %s1862_s24  ;;  %p147_p0 = scmp.ne.s32.totalorder %s1788_s20, %s1784_s19 }
   0x8   : > { %p135_p1 = scmp.eq.s32.totalorder %s134_s26, 0  ;;  %p148_p2 = scmp.eq.s32.totalorder %s1858_s22, 1 }
   0x9   : > { %p153_p3 = scmp.ne.s32.totalorder %s1784_s19, %s1780_s18  ;;  %p154_p4 = scmp.eq.s32.totalorder %s1103_s23, 1 }
   0xa   : > { %s1873_s27 = scalar_select %p135_p1, %s1788_s20, %s137_s25  }
   0xb   : > { %p1875_p5 = por %p148_p2, %p147_p0  ;;  %p1879_p6 = por %p154_p4, %p153_p3 }
   0xc   : > { %p1104_p7 = scmp.ge.s32.totalorder %s1792_s21, 1  ;;  %p161_p8 = scmp.lt.s32.totalorder %s1792_s21, 3 }
   0xd   : > { %s2178_s28 = scalar_select %p1875_p5, 1, 0 }
   0xe   : > { %s2179_s29 = scalar_select %p1879_p6, 1, 0 }
   0xf   : > { %p2175_p9 = scmp.eq.s32.totalorder %s1858_s22, 0  ;;  %p1886_p10 = pnand %p1104_p7, %p161_p8 }
  0x10   : > { %s1794_s6 = smov [#allocation2]   ;;  %s1795_s9 = smov [#allocation5]  }
  0x11   : > { %s2180_s30 = scalar_select %p1886_p10, 1, 0 }
  0x12   : > { %s179_s7 = sshll.u32 %s1794_s6, 4  ;;  %p1575_p11 = pneg %p1886_p10  ;;  %s180_s7 = int_to_ptr.vmem [resolvable:$true] %s179_s7 }
  0x13   : > { %s192_s10 = sshll.u32 %s1795_s9, 4  ;;  %s1666_s13 = scalar_lea.hbm %s2172_s3, 6144  ;;  %s1898_s10 = int_to_ptr.vmem [resolvable:$true] %s192_s10 }
  0x14   : > { %p1894_p12 = pnand %p2175_p9, %p1575_p11  ;;  %p1667_p13 = scmp.ne.s32.totalorder %s2172_s3, %s1666_s13 }
  0x15   : > { %p1673_p3 = scmp.lt.u32.totalorder %s1666_s13, %s2172_s3 }
  0x16   : > { %p1668_p0 = pneg %p1894_p12 }
  0x18   : > { %p1669_p1 = pnand %p1668_p0, %p1667_p13 }
  0x1a   : > { %p1670_p2 = pneg %p1669_p1 }
  0x1c   : > { %p1675_p4 = pnand %p1673_p3, %p1670_p2 }
  0x1e   : > { %1678 = shalt.err (!%p1675_p4)
}
  0x1f   : > { %s1679_s23 = scalar_lea.vmem %s180_s7, 6144  ;;  %p1687_p9 = scmp.lt.s32.totalorder %s180_s7, %s180_s7 }
  0x20   : > { %p1680_p7 = scmp.ne.s32.totalorder %s180_s7, %s1679_s23  ;;  %p1688_p6 = scmp.lt.s32.totalorder %s1679_s23, %s1679_s23 }
  0x22   : > { %p1682_p8 = pnand %p1680_p7, %p1668_p0  ;;  %p1689_p5 = por %p1688_p6, %p1687_p9 }
  0x24   : > { %p1683_p11 = pneg %p1682_p8 }
  0x26   : > { %p1690_p10 = pnand %p1689_p5, %p1683_p11 }
  0x28   : > { %1693 = shalt.err (!%p1690_p10)
}
  0x29   : > { %s1796_s25 = smov 128   ;;  %s1797_s26 = smov 8  }
  0x2a   : > { %1578 = dma.hbm_to_vmem [thread:$0]  (!%p1894_p12), %s2172_s3, 6144, %s180_s7, [#allocation3], %s1796_s25, %s1796_s25, %s1797_s26  }
  0x2b   : > { %s1694_s13 = scalar_lea.hbm %s2173_s4, 6144 }
  0x2c   : > { %p1695_p13 = scmp.ne.s32.totalorder %s2173_s4, %s1694_s13  ;;  %p1701_p9 = scmp.lt.u32.totalorder %s1694_s13, %s2173_s4 }
  0x2e   : > { %p1697_p5 = pnand %p1695_p13, %p1668_p0 }
  0x30   : > { %p1698_p6 = pneg %p1697_p5 }
  0x32   : > { %p1703_p10 = pnand %p1701_p9, %p1698_p6 }
  0x34   : > { %1706 = shalt.err (!%p1703_p10)
}
  0x35   : > { %s1707_s7 = scalar_lea.vmem %s1898_s10, 6144  ;;  %p1715_p4 = scmp.lt.s32.totalorder %s1898_s10, %s1898_s10 }
  0x36   : > { %p1708_p1 = scmp.ne.s32.totalorder %s1898_s10, %s1707_s7  ;;  %p1716_p7 = scmp.lt.s32.totalorder %s1707_s7, %s1707_s7 }
  0x38   : > { %p1710_p2 = pnand %p1708_p1, %p1668_p0  ;;  %p1717_p8 = por %p1716_p7, %p1715_p4 }
  0x3a   : > { %p1711_p3 = pneg %p1710_p2 }
  0x3c   : > { %p1718_p11 = pnand %p1717_p8, %p1711_p3 }
  0x3e   : > { %1721 = shalt.err (!%p1718_p11)
}
  0x3f   : > { %s1798_s23 = smov 384   ;;  %s1799_s25 = smov 24  }
  0x40   : > { %1581 = dma.hbm_to_vmem [thread:$0]  (!%p1894_p12), %s2173_s4, 6144, %s1898_s10, [#allocation6], %s1798_s23, %s1798_s23, %s1799_s25  }
  0x41   : > { %p2182_p13 = scmp.ne.s32.totalorder %s2180_s30, 0 }
  0x42   : > { %p2183_p0 = scmp.eq.s32.totalorder (!%p2182_p13), %s1858_s22, 0 }
  0x43   : > { %216 = sbr.rel (%p2182_p13) target bundleno = 1031 (0x407), region = 40 }
  0x4a   : > { %1767 = dma.done.wait (%p2183_p0), [#allocation3], 6144   ;;  %p2184_p5 = pmov %p2183_p0 }
  0x4b   : > { %p2185_p6 = pmov %p2183_p0 }
  0x4c   : > { %1769 = vsyncadd (%p2184_p5), [#allocation3], 4294961152 }
  0x4d   : > { %1771 = dma.done.wait (%p2185_p6), [#allocation6], 6144   ;;  %p2186_p9 = pmov %p2183_p0 }
  0x4e   : > { %p248_p10 = scmp.lt.s32.totalorder %s1858_s22, 1  ;;  %v279_v0 = vlaneseq  ;;  %v1800_v1 = vmov 1983009808   ;;  %v1801_v4 = vmov 0.0   ;;  %v1802_v5 = vmov 0   ;;  %v257_v11 = vld [vmem:[%s2171_s2] sm:$0xff] }
  0x4f   : > { %1773 = vsyncadd (%p2186_p9), [#allocation6], 4294961152  ;;  %v277_v2 = vunpack.c.l.s4 %v1800_v1  ;;  %1261 = vmatprep.subr.bf16.mxu1 %v1801_v4  ;;  %337 = vmatprep.mubr.bf16.mxu0 %v1802_v5  ;;  %vm1803_vm0 = vmmov 0   ;;  %vm295_vm1 = vcmask 1041408   ;;  %v258_v15 = vld [vmem:[%s2171_s2 + $0x8] sm:$0xff]  ;;  %v1637_v17 = vld [vmem:[%s2170_s1] sm:$0xff]  }
  0x50   : > { %s249_s30 = scalar_select %p248_p10, %s1858_s22, 1  ;;  %v280_v3 = vshrl.u32 %v279_v0, 7  ;;  %1263 = vmatprep.mubr.msk.bf16.mxu1 %vm1803_vm0, %v1801_v4  ;;  %1635 = vset.pattern.permute.xlu0 %v1802_v5  ;;  %vm291_vm2 = vcmask 31744   ;;  %v447_v18 = vld [vmem:[#allocation2 + $0x80] sm:$0xff]  ;;  %v448_v19 = vld [vmem:[#allocation2 + $0x88] sm:$0xff]  ;;  %v449_v27 = vld [vmem:[#allocation2 + $0x90] sm:$0xff] }
  0x51   : > { %v278_v6 = vunpack.c.0.s8 %v277_v2  ;;  %261 = vperm.xlu0 %1635, %v257_v11   ;;  %v463_v20 = vld [vmem:[#allocation2 + $0x100] sm:$0xff]  ;;  %v1973_v21 = vpack.c.bf16 %v448_v19, %v447_v18  ;;  %v464_v22 = vld [vmem:[#allocation2 + $0x108] sm:$0xff]  ;;  %v450_v28 = vld [vmem:[#allocation2 + $0x98] sm:$0xff]  ;;  %s245_s7 = sand.u32 1, %s1784_s19   ;;  %s1128_s25 = sshll.u32 %s1858_s22, 8 }
  0x52   : > { %s1564_s8 = smul.u32 6, %s249_s30  ;;  %v1975_v23 = vpack.c.bf16 %v464_v22, %v463_v20  ;;  %v431_v24 = vld [vmem:[#allocation2] sm:$0xff]  ;;  %v432_v25 = vld [vmem:[#allocation2 + $0x8] sm:$0xff]  ;;  %v465_v29 = vld [vmem:[#allocation2 + $0x110] sm:$0xff]  ;;  %v1983_v30 = vpack.c.bf16 %v450_v28, %v449_v27  ;;  %s1111_s23 = sshll.u32 %s245_s7, 4 }
  0x53   : > { %v281_v7 = vsub.s32 %v278_v6, %v280_v3  ;;  %v1978_v26 = vpack.c.bf16 %v432_v25, %v431_v24  ;;  %v466_v31 = vld [vmem:[#allocation2 + $0x118] sm:$0xff]  ;;  %v433_v32 = vld [vmem:[#allocation2 + $0x10] sm:$0xff]  ;;  %v451_v36 = vld [vmem:[#allocation2 + $0xa0] sm:$0xff]  ;;  %s247_s26 = scalar_lea.vmem [#allocation7], %s1111_s23  ;;  %s2124_s10 = scalar_lea.hbm %s2174_s5, %s1128_s25 }
  0x54   : > { %s252_s11 = scalar_lea.vmem %s2169_s0, %s1564_s8  ;;  %v434_v33 = vld [vmem:[#allocation2 + $0x18] sm:$0xff]  ;;  %v1985_v34 = vpack.c.bf16 %v466_v31, %v465_v29  ;;  %v452_v37 = vld [vmem:[#allocation2 + $0xa8] sm:$0xff]  ;;  %v467_v38 = vld [vmem:[#allocation2 + $0x120] sm:$0xff]  ;;  %s1019_s6 = sshll.u32 %s247_s26, 4  ;;  %s2126_s6 = int_to_ptr.vmem [resolvable:$true] %s1019_s6 }
  0x55   : > { %v254_v8 = vld [vmem:[%s252_s11] sm:$0x3f]  ;;  %266 = vperm.xlu0 %1635, %v258_v15   ;;  %v1987_v35 = vpack.c.bf16 %v434_v33, %v433_v32  ;;  %v1993_v39 = vpack.c.bf16 %v452_v37, %v451_v36  ;;  %v468_v40 = vld [vmem:[#allocation2 + $0x128] sm:$0xff]  ;;  %v453_v45 = vld [vmem:[#allocation2 + $0xb0] sm:$0xff]  ;;  %s2128_s9 = scalar_lea.sflag [#allocation4], %s245_s7  ;;  %s1722_s22 = scalar_lea.vmem %s2126_s6, 256 }
  0x56   : > { %v282_v9 = vrot.slane %v254_v8, %v281_v7  ;;  %v275_v10 = vcombine.high %v254_v8, %v254_v8  ;;  %v435_v41 = vld [vmem:[#allocation2 + $0x20] sm:$0xff]  ;;  %v436_v42 = vld [vmem:[#allocation2 + $0x28] sm:$0xff]  ;;  %v1995_v43 = vpack.c.bf16 %v468_v40, %v467_v38  ;;  %v454_v46 = vld [vmem:[#allocation2 + $0xb8] sm:$0xff]  ;;  %p1723_p12 = scmp.ne.s32.totalorder %s2126_s6, %s1722_s22  ;;  %p2187_p1 = scmp.ne.s32.totalorder %s2178_s28, 0 }
  0x57   : > { %v1997_v44 = vpack.c.bf16 %v436_v42, %v435_v41  ;;  %v469_v47 = vld [vmem:[#allocation2 + $0x130] sm:$0xff]  ;;  %v2003_v48 = vpack.c.bf16 %v454_v46, %v453_v45  ;;  %v470_v49 = vld [vmem:[#allocation2 + $0x138] sm:$0xff]  ;;  %v455_v54 = vld [vmem:[#allocation2 + $0xc0] sm:$0xff]  ;;  %s1804_s11 = smov [#allocation7]  }
  0x58   : > { %v290_v12 = vcombine.high %v282_v9, %v282_v9  ;;  %v297_v13 = vsel %vm295_vm1, %v282_v9, 0  ;;  %v289_v14 = vrot.slane %v275_v10, %v281_v7  ;;  %v437_v50 = vld [vmem:[#allocation2 + $0x30] sm:$0xff]  ;;  %v438_v51 = vld [vmem:[#allocation2 + $0x38] sm:$0xff]  ;;  %v2005_v52 = vpack.c.bf16 %v470_v49, %v469_v47  ;;  %v456_v55 = vld [vmem:[#allocation2 + $0xc8] sm:$0xff]  ;;  %p1724_p2 = pnand %p1723_p12, %p2187_p1  ;;  %s1726_s12 = sshll.u32 %s1804_s11, 4  ;;  %s1727_s12 = int_to_ptr.vmem [resolvable:$false] %s1726_s12 }
  0x59   : > { %v2007_v53 = vpack.c.bf16 %v438_v51, %v437_v50  ;;  %v471_v56 = vld [vmem:[#allocation2 + $0x140] sm:$0xff]  ;;  %v2013_v57 = vpack.c.bf16 %v456_v55, %v455_v54  ;;  %v472_v58 = vld [vmem:[#allocation2 + $0x148] sm:$0xff]  ;;  %v457_v63 = vld [vmem:[#allocation2 + $0xd0] sm:$0xff]  ;;  %s1728_s13 = scalar_lea.vmem %s1727_s12, 512  ;;  %p1729_p4 = scmp.lt.s32.totalorder %s2126_s6, %s1727_s12 }
  0x5a   : > { %1114 = vmatprep.subr.msk.bf16.mxu0 %vm295_vm1, %v290_v12  ;;  %v303_v16 = vsel %vm295_vm1, %v289_v14, 0  ;;  %v439_v59 = vld [vmem:[#allocation2 + $0x40] sm:$0xff]  ;;  %v440_v60 = vld [vmem:[#allocation2 + $0x48] sm:$0xff]  ;;  %v2015_v61 = vpack.c.bf16 %v472_v58, %v471_v56  ;;  %v458_v0 = vld [vmem:[#allocation2 + $0xd8] sm:$0xff]  ;;  %p1725_p3 = pneg %p1724_p2  ;;  %p1730_p7 = scmp.lt.s32.totalorder %s1728_s13, %s1722_s22 }
  0x5b   : > { %306 = vmatpush1.bf16.msra.mxu0 %v297_v13  ;;  %1262 = vmatpush3.bf16.msra.mxu1 %v303_v16  ;;  %v2017_v62 = vpack.c.bf16 %v440_v60, %v439_v59  ;;  %v473_v1 = vld [vmem:[#allocation2 + $0x150] sm:$0xff]  ;;  %v2023_v2 = vpack.c.bf16 %v458_v0, %v457_v63  ;;  %v474_v3 = vld [vmem:[#allocation2 + $0x158] sm:$0xff]  ;;  %v459_v9 = vld [vmem:[#allocation2 + $0xe0] sm:$0xff] }
  0x5c   : > { %1373 = vmatprep.subr.bf16.mxu0 %v1973_v21  ;;  %1405 = vmatprep.subr.bf16.mxu1 %v1975_v23  ;;  %v441_v5 = vld [vmem:[#allocation2 + $0x50] sm:$0xff]  ;;  %v442_v6 = vld [vmem:[#allocation2 + $0x58] sm:$0xff]  ;;  %v2025_v7 = vpack.c.bf16 %v474_v3, %v473_v1  ;;  %v460_v10 = vld [vmem:[#allocation2 + $0xe8] sm:$0xff]  ;;  %p1731_p8 = por %p1730_p7, %p1729_p4 }
  0x5d   : > { %v2027_v8 = vpack.c.bf16 %v442_v6, %v441_v5  ;;  %v475_v11 = vld [vmem:[#allocation2 + $0x160] sm:$0xff]  ;;  %v2033_v12 = vpack.c.bf16 %v460_v10, %v459_v9  ;;  %v476_v13 = vld [vmem:[#allocation2 + $0x168] sm:$0xff]  ;;  %v461_v18 = vld [vmem:[#allocation2 + $0xf0] sm:$0xff] }
  0x5e   : > { %1115 = vmatmul.mubr.msk.bf16.vlgmr.msra.gmra.mrb[0].mxu0 %vm291_vm2, %v1637_v17  ;;  %1264 = vmatmul.mubr.msk.bf16.vlgmr.msra.gmra.mrb[0].mxu1 %vm291_vm2, %v1637_v17  ;;  %v443_v14 = vld [vmem:[#allocation2 + $0x60] sm:$0xff]  ;;  %v444_v15 = vld [vmem:[#allocation2 + $0x68] sm:$0xff]  ;;  %v2035_v16 = vpack.c.bf16 %v476_v13, %v475_v11  ;;  %v462_v19 = vld [vmem:[#allocation2 + $0xf8] sm:$0xff]  ;;  %p1732_p11 = pnand %p1731_p8, %p1725_p3 }
  0x5f   : > { %1375 = vmatpush3.bf16.msra.mxu0 %v1978_v26  ;;  %1407 = vmatpush3.bf16.msra.mxu1 %v1975_v23  ;;  %v2037_v17 = vpack.c.bf16 %v444_v15, %v443_v14  ;;  %v477_v20 = vld [vmem:[#allocation2 + $0x170] sm:$0xff]  ;;  %v2043_v22 = vpack.c.bf16 %v462_v19, %v461_v18  ;;  %v478_v24 = vld [vmem:[#allocation2 + $0x178] sm:$0xff]  ;;  %v632_v31 = vld [vmem:[#allocation5 + $0x8] sm:$0xff] }
  0x60   : > { %1377 = vmatprep.subr.bf16.mxu0 %v1983_v30  ;;  %1409 = vmatprep.subr.bf16.mxu1 %v1985_v34  ;;  %v445_v25 = vld [vmem:[#allocation2 + $0x70] sm:$0xff]  ;;  %v446_v27 = vld [vmem:[#allocation2 + $0x78] sm:$0xff]  ;;  %v2045_v28 = vpack.c.bf16 %v478_v24, %v477_v20  ;;  %v635_v32 = vld [vmem:[#allocation5 + $0x20] sm:$0xff] }
  0x61   : > { %v2047_v29 = vpack.c.bf16 %v446_v27, %v445_v25  ;;  %v1436_v33 = vpack.c.bf16 %v635_v32, %v632_v31  ;;  %v633_v36 = vld [vmem:[#allocation5 + $0x10] sm:$0xff]  ;;  %v636_v37 = vld [vmem:[#allocation5 + $0x28] sm:$0xff] }
  0x62   : > { %v2053_v38 = vpack.c.bf16 %v636_v37, %v633_v36  ;;  %v634_v36 = vld [vmem:[#allocation5 + $0x18] sm:$0xff] }
  0x63   : > { %1379 = vmatpush3.bf16.msra.mxu0 %v1987_v35  ;;  %1411 = vmatpush3.bf16.msra.mxu1 %v1985_v34 }
  0x64   : > { %1381 = vmatprep.subr.bf16.mxu0 %v1993_v39  ;;  %1413 = vmatprep.subr.bf16.mxu1 %v1995_v43 }
  0x67   : > { %1383 = vmatpush3.bf16.msra.mxu0 %v1997_v44  ;;  %1415 = vmatpush3.bf16.msra.mxu1 %v1995_v43 }
  0x68   : > { %1385 = vmatprep.subr.bf16.mxu0 %v2003_v48  ;;  %1417 = vmatprep.subr.bf16.mxu1 %v2005_v52 }
  0x6b   : > { %1387 = vmatpush3.bf16.msra.mxu0 %v2007_v53  ;;  %1419 = vmatpush3.bf16.msra.mxu1 %v2005_v52 }
  0x6c   : > { %1389 = vmatprep.subr.bf16.mxu0 %v2013_v57  ;;  %1421 = vmatprep.subr.bf16.mxu1 %v2015_v61 }
  0x6f   : > { %1391 = vmatpush3.bf16.msra.mxu0 %v2017_v62  ;;  %1423 = vmatpush3.bf16.msra.mxu1 %v2015_v61 }
  0x70   : > { %1393 = vmatprep.subr.bf16.mxu0 %v2023_v2  ;;  %1425 = vmatprep.subr.bf16.mxu1 %v2025_v7 }
  0x73   : > { %1395 = vmatpush3.bf16.msra.mxu0 %v2027_v8  ;;  %1427 = vmatpush3.bf16.msra.mxu1 %v2025_v7 }
  0x74   : > { %1397 = vmatprep.subr.bf16.mxu0 %v2033_v12  ;;  %1429 = vmatprep.subr.bf16.mxu1 %v2035_v16 }
  0x77   : > { %1399 = vmatpush3.bf16.msra.mxu0 %v2037_v17  ;;  %1431 = vmatpush3.bf16.msra.mxu1 %v2035_v16 }
  0x78   : > { %1401 = vmatprep.subr.bf16.mxu0 %v2043_v22  ;;  %1433 = vmatprep.subr.bf16.mxu1 %v2045_v28 }
  0x7b   : > { %1403 = vmatpush3.bf16.msra.mxu0 %v2047_v29  ;;  %1435 = vmatpush3.bf16.msra.mxu1 %v2045_v28 }
  0x7c   : > { %1437 = vmatprep.subr.bf16.mxu0 %v1436_v33  ;;  %1469 = vmatprep.subr.bf16.mxu1 %v2053_v38  ;;  %v631_v33 = vld [vmem:[#allocation5] sm:$0xff] }
  0xd0   : > { %v262_v40 = vpop.permute.xlu0 %261 }
  0xd4   : > { %v267_v41 = vpop.permute.xlu0 %266 }
 0x131   : > { %v339_v42 = vpop.f32.mrb[0].mxu0  ;;  %v382_v45 = vpop.f32.mrb[0].mxu1 }
 0x132   : > { %v340_v46 = vadd.f32 %v339_v42, %v262_v40  ;;  %v383_v47 = vadd.f32 %v382_v45, %v262_v40  ;;  %v341_v49 = vpop.f32.mrb[1].mxu0  ;;  %v1265_v50 = vpop.f32.mrb[1].mxu1 }
 0x133   : > { %v342_v51 = vadd.f32 %v341_v49, %v262_v40  ;;  %v343_v54 = vpop.f32.mrb[2].mxu0  ;;  %v385_v55 = vpop.f32.mrb[2].mxu1  ;;  %v638_v40 = vld [vmem:[#allocation5 + $0x38] sm:$0xff] }
 0x134   : > { %v1117_v56 = vmul.f32 -1.442695, %v340_v46  ;;  %v1119_v58 = vmul.f32 -1.442695, %v383_v47  ;;  %v2056_v59 = vadd.f32 %v343_v54, %v267_v41  ;;  %v386_v60 = vadd.f32 %v385_v55, %v267_v41  ;;  %v345_v63 = vpop.f32.mrb[3].mxu0  ;;  %v1266_v0 = vpop.f32.mrb[3].mxu1 }
 0x135   : > { %v1118_v1 = vmul.f32 -1.442695, %v342_v51  ;;  %v346_v3 = vadd.f32 %v345_v63, %v267_v41  ;;  %v641_v41 = vld [vmem:[#allocation5 + $0x50] sm:$0xff]  ;;  %v1438_v54 = vpack.c.bf16 %v634_v36, %v631_v33  ;;  %v639_v55 = vld [vmem:[#allocation5 + $0x40] sm:$0xff]  ;;  %v652_v33 = vld [vmem:[#allocation5 + $0xa8] sm:$0xff] }
 0x136   : > { %1638 = vpow2.f32 %v1117_v56  ;;  %v1120_v5 = vmul.f32 -1.442695, %v2056_v59  ;;  %v1122_v6 = vmul.f32 -1.442695, %v386_v60  ;;  %v642_v56 = vld [vmem:[#allocation5 + $0x58] sm:$0xff]  ;;  %v1440_v0 = vpack.c.bf16 %v641_v41, %v638_v40  ;;  %v656_v36 = vld [vmem:[#allocation5 + $0xc8] sm:$0xff] }
 0x137   : > { %1640 = vpow2.f32 %v1119_v58  ;;  %v1121_v9 = vmul.f32 -1.442695, %v346_v3  ;;  %v657_v41 = vld [vmem:[#allocation5 + $0xd0] sm:$0xff] }
 0x138   : > { %1642 = vpow2.f32 %v1118_v1  ;;  %v637_v1 = vld [vmem:[#allocation5 + $0x30] sm:$0xff] }
 0x139   : > { %1644 = vpow2.f32 %v1120_v5  ;;  %v640_v5 = vld [vmem:[#allocation5 + $0x48] sm:$0xff] }
 0x13a   : > { %1646 = vpow2.f32 %v1122_v6 }
 0x13b   : > { %1648 = vpow2.f32 %v1121_v9 }
 0x140   : > { %v1639_v10 = vpop.eup %1638 }
 0x141   : > { %v1641_v11 = vpop.eup %1640  ;;  %v407_v13 = vadd.f32 1.0, %v1639_v10  ;;  %v647_v10 = vld [vmem:[#allocation5 + $0x80] sm:$0xff] }
 0x142   : > { %v1643_v14 = vpop.eup %1642  ;;  %v409_v15 = vadd.f32 1.0, %v1641_v11  ;;  %v1472_v11 = vpack.c.bf16 %v642_v56, %v639_v55  ;;  %v658_v55 = vld [vmem:[#allocation5 + $0xd8] sm:$0xff] }
 0x143   : > { %v1645_v18 = vpop.eup %1644  ;;  %1650 = vrcp.f32 %v407_v13  ;;  %v408_v19 = vadd.f32 1.0, %v1643_v14  ;;  %v645_v13 = vld [vmem:[#allocation5 + $0x70] sm:$0xff]  ;;  %v648_v14 = vld [vmem:[#allocation5 + $0x88] sm:$0xff]  ;;  %v662_v56 = vld [vmem:[#allocation5 + $0xf8] sm:$0xff] }
 0x144   : > { %v1647_v20 = vpop.eup %1646  ;;  %1652 = vrcp.f32 %v409_v15  ;;  %v410_v24 = vadd.f32 1.0, %v1645_v18  ;;  %v643_v18 = vld [vmem:[#allocation5 + $0x60] sm:$0xff] }
 0x145   : > { %v1649_v25 = vpop.eup %1648  ;;  %1654 = vrcp.f32 %v408_v19  ;;  %v412_v27 = vadd.f32 1.0, %v1647_v20  ;;  %v646_v19 = vld [vmem:[#allocation5 + $0x78] sm:$0xff]  ;;  %v653_v20 = vld [vmem:[#allocation5 + $0xb0] sm:$0xff] }
 0x146   : > { %1656 = vrcp.f32 %v410_v24  ;;  %v411_v31 = vadd.f32 1.0, %v1649_v25  ;;  %v1476_v24 = vpack.c.bf16 %v648_v14, %v645_v13  ;;  %v1446_v25 = vpack.c.bf16 %v646_v19, %v643_v18  ;;  %v663_v13 = vld [vmem:[#allocation5 + $0x100] sm:$0xff]  ;;  %v670_v19 = vld [vmem:[#allocation5 + $0x138] sm:$0xff] }
 0x147   : > { %1658 = vrcp.f32 %v412_v27  ;;  %v651_v27 = vld [vmem:[#allocation5 + $0xa0] sm:$0xff] }
 0x148   : > { %1660 = vrcp.f32 %v411_v31  ;;  %v654_v31 = vld [vmem:[#allocation5 + $0xb8] sm:$0xff]  ;;  %v667_v18 = vld [vmem:[#allocation5 + $0x120] sm:$0xff] }
 0x14d   : > { %v1651_v32 = vpop.eup %1650 }
 0x14e   : > { %v1653_v37 = vpop.eup %1652  ;;  %v2063_v63 = vmul.f32 %v1651_v32, %v340_v46  ;;  %v1442_v46 = vpack.c.bf16 %v640_v5, %v637_v1  ;;  %v649_v32 = vld [vmem:[#allocation5 + $0x90] sm:$0xff] }
 0x14f   : > { %v1655_v42 = vpop.eup %1654  ;;  %v2059_v45 = vmul.f32 %v1653_v37, %v383_v47  ;;  %v644_v47 = vld [vmem:[#allocation5 + $0x68] sm:$0xff]  ;;  %v659_v37 = vld [vmem:[#allocation5 + $0xe0] sm:$0xff]  ;;  %v1450_v40 = vpack.c.bf16 %v652_v33, %v649_v32  ;;  %v673_v32 = vld [vmem:[#allocation5 + $0x150] sm:$0xff] }
 0x150   : > { %v1657_v49 = vpop.eup %1656  ;;  %v2061_v50 = vmul.f32 %v1655_v42, %v342_v51  ;;  %v660_v42 = vld [vmem:[#allocation5 + $0xe8] sm:$0xff] }
 0x151   : > { %v1659_v58 = vpop.eup %1658  ;;  %1299 = vmatprep.mubr.f32.mxu1 %v2059_v45  ;;  %v2074_v15 = vmul.f32 %v1657_v49, %v2056_v59  ;;  %v1452_v49 = vpack.c.bf16 %v659_v37, %v656_v36  ;;  %v676_v33 = vld [vmem:[#allocation5 + $0x168] sm:$0xff] }
 0x152   : > { %v1661_v6 = vpop.eup %1660  ;;  %v2066_v9 = vmul.f32 %v1659_v58, %v386_v60  ;;  %543 = vmatprep.mubr.f32.mxu0 %v2061_v50  ;;  %v1444_v60 = vpack.c.bf16 %v647_v10, %v644_v47  ;;  %v665_v58 = vld [vmem:[#allocation5 + $0x110] sm:$0xff]  ;;  %v664_v47 = vld [vmem:[#allocation5 + $0x108] sm:$0xff]  ;;  %v1466_v37 = vpack.c.bf16 %v676_v33, %v673_v32 }
 0x153   : > { %v2069_v51 = vmul.f32 %v1661_v6, %v346_v3  ;;  %544 = vmatmul.mubr.f32.vlgmr.msra.gmra.mrb[4].mxu0 %v2063_v63  ;;  %v650_v3 = vld [vmem:[#allocation5 + $0x98] sm:$0xff]  ;;  %v1456_v5 = vpack.c.bf16 %v665_v58, %v662_v56  ;;  %v661_v6 = vld [vmem:[#allocation5 + $0xf0] sm:$0xff] }
 0x154   : > { %1300 = vmatmul.mubr.f32.vlgmr.msra.gmra.mrb[4].mxu1 %v2066_v9  ;;  %1439 = vmatpush1.bf16.msra.mxu0 %v1438_v54  ;;  %v1448_v59 = vpack.c.bf16 %v653_v20, %v650_v3  ;;  %v655_v54 = vld [vmem:[#allocation5 + $0xc0] sm:$0xff]  ;;  %v1458_v10 = vpack.c.bf16 %v664_v47, %v661_v6  ;;  %v1462_v20 = vpack.c.bf16 %v670_v19, %v667_v18 }
 0x155   : > { %548 = vmatprep.mubr.f32.mxu0 %v2069_v51  ;;  %1441 = vmatprep.subr.bf16.mxu0 %v1440_v0  ;;  %v1484_v0 = vpack.c.bf16 %v660_v42, %v657_v41  ;;  %v1454_v1 = vpack.c.bf16 %v658_v55, %v655_v54 }
 0x156   : > { %1471 = vmatpush3.bf16.msra.mxu1 %v2053_v38  ;;  %v1480_v38 = vpack.c.bf16 %v654_v31, %v651_v27  ;;  %v669_v27 = vld [vmem:[#allocation5 + $0x130] sm:$0xff] }
 0x157   : > { %549 = vmatmul.mubr.f32.gmra.mrb[6].mxu0 %v2074_v15  ;;  %1473 = vmatprep.subr.bf16.mxu1 %v1472_v11 }
 0x158   : > { %1443 = vmatpush1.bf16.msra.mxu0 %v1442_v46  ;;  %743 = vmatprep.mubr.f32.mxu0 %v1801_v4  ;;  %v671_v46 = vld [vmem:[#allocation5 + $0x140] sm:$0xff] }
 0x159   : > { %1445 = vmatprep.subr.bf16.mxu0 %v1444_v60  ;;  %v666_v60 = vld [vmem:[#allocation5 + $0x118] sm:$0xff] }
 0x15a   : > { %1475 = vmatpush3.bf16.msra.mxu1 %v1472_v11  ;;  %v668_v11 = vld [vmem:[#allocation5 + $0x128] sm:$0xff]  ;;  %v1488_v3 = vpack.c.bf16 %v666_v60, %v663_v13 }
 0x15b   : > { %1477 = vmatprep.subr.bf16.mxu1 %v1476_v24  ;;  %v1460_v14 = vpack.c.bf16 %v671_v46, %v668_v11 }
 0x15c   : > { %1447 = vmatpush1.bf16.msra.mxu0 %v1446_v25  ;;  %v677_v25 = vld [vmem:[#allocation5 + $0x170] sm:$0xff] }
 0x15d   : > { %1449 = vmatprep.subr.bf16.mxu0 %v1448_v59  ;;  %v672_v59 = vld [vmem:[#allocation5 + $0x148] sm:$0xff] }
 0x15e   : > { %1479 = vmatpush3.bf16.msra.mxu1 %v1476_v24  ;;  %v674_v24 = vld [vmem:[#allocation5 + $0x158] sm:$0xff]  ;;  %v1492_v36 = vpack.c.bf16 %v672_v59, %v669_v27 }
 0x15f   : > { %1481 = vmatprep.subr.bf16.mxu1 %v1480_v38  ;;  %v1464_v31 = vpack.c.bf16 %v677_v25, %v674_v24 }
 0x160   : > { %1451 = vmatpush1.bf16.msra.mxu0 %v1450_v40  ;;  %v678_v40 = vld [vmem:[#allocation5 + $0x178] sm:$0xff] }
 0x161   : > { %1453 = vmatprep.subr.bf16.mxu0 %v1452_v49 }
 0x162   : > { %1483 = vmatpush3.bf16.msra.mxu1 %v1480_v38  ;;  %v675_v38 = vld [vmem:[#allocation5 + $0x160] sm:$0xff] }
 0x163   : > { %1485 = vmatprep.subr.bf16.mxu1 %v1484_v0  ;;  %v1496_v41 = vpack.c.bf16 %v678_v40, %v675_v38 }
 0x164   : > { %1455 = vmatpush1.bf16.msra.mxu0 %v1454_v1 }
 0x165   : > { %1457 = vmatprep.subr.bf16.mxu0 %v1456_v5 }
 0x166   : > { %1487 = vmatpush3.bf16.msra.mxu1 %v1484_v0 }
 0x167   : > { %1489 = vmatprep.subr.bf16.mxu1 %v1488_v3 }
 0x168   : > { %1459 = vmatpush1.bf16.msra.mxu0 %v1458_v10 }
 0x169   : > { %1461 = vmatprep.subr.bf16.mxu0 %v1460_v14 }
 0x16a   : > { %1491 = vmatpush3.bf16.msra.mxu1 %v1488_v3 }
 0x16b   : > { %1493 = vmatprep.subr.bf16.mxu1 %v1492_v36 }
 0x16c   : > { %1463 = vmatpush1.bf16.msra.mxu0 %v1462_v20 }
 0x16d   : > { %1465 = vmatprep.subr.bf16.mxu0 %v1464_v31 }
 0x16e   : > { %1495 = vmatpush3.bf16.msra.mxu1 %v1492_v36 }
 0x16f   : > { %1497 = vmatprep.subr.bf16.mxu1 %v1496_v41 }
 0x170   : > { %1467 = vmatpush1.bf16.msra.mxu0 %v1466_v37 }
 0x171   : > { %1501 = vmatprep.subr.bf16.mxu0 %v1973_v21 }
 0x172   : > { %1499 = vmatpush3.bf16.msra.mxu1 %v1496_v41 }
 0x173   : > { %1533 = vmatprep.subr.bf16.mxu1 %v1975_v23 }
 0x226   : > { %v1163_v42 = vpop.f32.mrb[4].mxu0 }
 0x227   : > { %v1301_v49 = vpop.f32.mrb[4].mxu1  ;;  %v1164_v54 = vpop.f32.mrb[5].mxu0 }
 0x228   : > { %v1165_v55 = vadd.f32 %v1164_v54, %v1163_v42  ;;  %v620_v56 = vpop.f32.mrb[5].mxu1 }
 0x22a   : > { %v621_v58 = vadd.f32 %v1165_v55, %v620_v56  ;;  %v1166_v0 = vpop.f32.mrb[6].mxu0 }
 0x22b   : > { %v1167_v1 = vpop.f32.mrb[7].mxu0 }
 0x22c   : > { %v629_v5 = vmul.f32 0.0625, %v621_v58  ;;  %v1168_v6 = vadd.f32 %v1167_v1, %v1166_v0 }
 0x22e   : > { %v626_v47 = vadd.f32 %v1301_v49, %v1168_v6  ;;  %744 = vmatmul.mubr.f32.vlgmr.msra.gmra.mrb[8].mxu0 %v629_v5  ;;  %1334 = vmatprep.mubr.f32.mxu1 %v629_v5 }
 0x22f   : > { %749 = vmatprep.mubr.f32.mxu0 %v1801_v4  ;;  %1503 = vmatpush3.bf16.msra.mxu0 %v1978_v26 }
 0x230   : > { %v630_v21 = vmul.f32 0.0625, %v626_v47  ;;  %1505 = vmatprep.subr.bf16.mxu0 %v1983_v30 }
 0x232   : > { %750 = vmatmul.mubr.f32.gmra.mrb[10].mxu0 %v630_v21  ;;  %1335 = vmatmul.mubr.f32.vlgmr.msra.gmra.mrb[6].mxu1 %v630_v21 }
 0x233   : > { %1507 = vmatpush3.bf16.msra.mxu0 %v1987_v35  ;;  %1535 = vmatpush3.bf16.msra.mxu1 %v1975_v23 }
 0x234   : > { %1509 = vmatprep.subr.bf16.mxu0 %v1993_v39  ;;  %1537 = vmatprep.subr.bf16.mxu1 %v1985_v34 }
 0x237   : > { %1511 = vmatpush3.bf16.msra.mxu0 %v1997_v44  ;;  %1539 = vmatpush3.bf16.msra.mxu1 %v1985_v34 }
 0x238   : > { %1513 = vmatprep.subr.bf16.mxu0 %v2003_v48  ;;  %1541 = vmatprep.subr.bf16.mxu1 %v1995_v43 }
 0x23b   : > { %1515 = vmatpush3.bf16.msra.mxu0 %v2007_v53  ;;  %1543 = vmatpush3.bf16.msra.mxu1 %v1995_v43 }
 0x23c   : > { %1517 = vmatprep.subr.bf16.mxu0 %v2013_v57  ;;  %1545 = vmatprep.subr.bf16.mxu1 %v2005_v52 }
 0x23f   : > { %1519 = vmatpush3.bf16.msra.mxu0 %v2017_v62  ;;  %1547 = vmatpush3.bf16.msra.mxu1 %v2005_v52 }
 0x240   : > { %1521 = vmatprep.subr.bf16.mxu0 %v2023_v2  ;;  %1549 = vmatprep.subr.bf16.mxu1 %v2015_v61 }
 0x243   : > { %1523 = vmatpush3.bf16.msra.mxu0 %v2027_v8  ;;  %1551 = vmatpush3.bf16.msra.mxu1 %v2015_v61 }
 0x244   : > { %1525 = vmatprep.subr.bf16.mxu0 %v2033_v12  ;;  %1553 = vmatprep.subr.bf16.mxu1 %v2025_v7 }
 0x247   : > { %1527 = vmatpush3.bf16.msra.mxu0 %v2037_v17  ;;  %1555 = vmatpush3.bf16.msra.mxu1 %v2025_v7 }
 0x248   : > { %1529 = vmatprep.subr.bf16.mxu0 %v2043_v22  ;;  %1557 = vmatprep.subr.bf16.mxu1 %v2035_v16 }
 0x24b   : > { %1531 = vmatpush3.bf16.msra.mxu0 %v2047_v29  ;;  %1559 = vmatpush3.bf16.msra.mxu1 %v2035_v16 }
 0x24c   : > { %1561 = vmatprep.subr.bf16.mxu1 %v2045_v28 }
 0x24f   : > { %1563 = vmatpush3.bf16.msra.mxu1 %v2045_v28 }
 0x301   : > { %v745_v4 = vpop.f32.mrb[8].mxu0 }
 0x302   : > { %v831_v23 = vsub.f32 %v2063_v63, %v745_v4  ;;  %v747_v26 = vpop.f32.mrb[9].mxu0 }
 0x303   : > { %v832_v30 = vsub.f32 %v2061_v50, %v747_v26 }
 0x304   : > { %v837_v43 = vmul.f32 %v831_v23, %v831_v23 }
 0x305   : > { %v838_v34 = vmul.f32 %v832_v30, %v832_v30  ;;  %v751_v35 = vpop.f32.mrb[10].mxu0  ;;  %v1336_v39 = vpop.f32.mrb[6].mxu1 }
 0x306   : > { %v834_v44 = vsub.f32 %v2074_v15, %v751_v35  ;;  %v836_v48 = vsub.f32 %v2066_v9, %v1336_v39  ;;  %v753_v52 = vpop.f32.mrb[11].mxu0  ;;  %v822_v53 = vpop.f32.mrb[7].mxu1 }
 0x307   : > { %v835_v57 = vsub.f32 %v2069_v51, %v753_v52  ;;  %v833_v61 = vsub.f32 %v2059_v45, %v822_v53  ;;  %907 = vmatprep.mubr.f32.mxu0 %v838_v34 }
 0x308   : > { %908 = vmatmul.mubr.f32.vlgmr.msra.gmra.mrb[12].mxu0 %v837_v43  ;;  %v840_v7 = vmul.f32 %v834_v44, %v834_v44  ;;  %v842_v8 = vmul.f32 %v836_v48, %v836_v48 }
 0x309   : > { %v841_v62 = vmul.f32 %v835_v57, %v835_v57  ;;  %v839_v2 = vmul.f32 %v833_v61, %v833_v61 }
 0x30b   : > { %912 = vmatprep.mubr.f32.mxu0 %v841_v62  ;;  %1369 = vmatprep.mubr.f32.mxu1 %v839_v2 }
 0x30c   : > { %913 = vmatmul.mubr.f32.gmra.mrb[14].mxu0 %v840_v7  ;;  %1370 = vmatmul.mubr.f32.vlgmr.msra.gmra.mrb[8].mxu1 %v842_v8 }
 0x3db   : > { %v1237_v12 = vpop.f32.mrb[12].mxu0 }
 0x3dc   : > { %v1238_v16 = vpop.f32.mrb[13].mxu0 }
 0x3dd   : > { %v1239_v17 = vadd.f32 %v1238_v16, %v1237_v12 }
 0x3df   : > { %v1240_v22 = vpop.f32.mrb[14].mxu0  ;;  %v1371_v28 = vpop.f32.mrb[8].mxu1 }
 0x3e0   : > { %v1241_v29 = vpop.f32.mrb[15].mxu0  ;;  %v984_v50 = vpop.f32.mrb[9].mxu1 }
 0x3e1   : > { %v1242_v45 = vadd.f32 %v1241_v29, %v1240_v22  ;;  %v985_v63 = vadd.f32 %v1239_v17, %v984_v50 }
 0x3e3   : > { %v990_v9 = vadd.f32 %v1371_v28, %v1242_v45  ;;  %v993_v51 = vmul.f32 0.06666667, %v985_v63 }
 0x3e5   : > { %v994_v15 = vmul.f32 0.06666667, %v990_v9  ;;  %v995_v10 = vmax.f32 %v993_v51, 1e-06 }
 0x3e7   : > { %v996_v11 = vmax.f32 %v994_v15, 1e-06  ;;  %v997_v46 = vmin.f32 %v995_v10, 1000000.0 }
 0x3e9   : > { %v998_v13 = vmin.f32 %v996_v11, 1000000.0  ;;  %1662 = vlog2.f32 %v997_v46 }
 0x3eb   : > { %1664 = vlog2.f32 %v998_v13 }
 0x3f3   : > { %v1663_v14 = vpop.eup %1662 }
 0x3f4   : > { %v1000_v60 = vmul.f32 0.6931472, %v1663_v14 }
 0x3f5   : > { %v1665_v18 = vpop.eup %1664 }
 0x3f6   : > { %v1002_v19 = vmul.f32 0.6931472, %v1665_v18  ;;  %1003 = vst [vmem:[%s247_s26] sm:$0xff] %v1000_v60 }
 0x3f8   : > { %1004 = vst [vmem:[%s247_s26 + $0x8] sm:$0xff] %v1002_v19 }
 0x3f9   : > { %1735 = shalt.err (!%p1732_p11)
}
 0x3fa   : > { %s1736_s14 = scalar_lea.hbm %s2124_s10, 256  ;;  %s1740_s17 = scalar_lea.hbm %s2174_s5, 512 }
 0x3fb   : > { %p1737_p13 = scmp.ne.s32.totalorder %s2124_s10, %s1736_s14  ;;  %p1741_p6 = scmp.lt.u32.totalorder %s2124_s10, %s2174_s5 }
 0x3fc   : > { %p1742_p9 = scmp.lt.u32.totalorder %s1740_s17, %s1736_s14  ;;  %p1744_p12 = scmp.lt.u32.totalorder %s1736_s14, %s2124_s10 }
 0x3fd   : > { %p1738_p0 = pnand %p1737_p13, %p2187_p1 }
 0x3fe   : > { %p1743_p10 = por %p1742_p9, %p1741_p6 }
 0x3ff   : > { %p1739_p5 = pneg %p1738_p0 }
 0x400   : > { %p1745_p2 = por %p1744_p12, %p1743_p10 }
 0x402   : > { %p1746_p3 = pnand %p1745_p2, %p1739_p5 }
 0x404   : > { %1749 = shalt.err (!%p1746_p3)
}
 0x405   : > { %s1805_s25 = smov 128   ;;  %s1806_s26 = smov 8  }
 0x406   : > { %1573 = dma.vmem_to_hbm [thread:$0]  (%p2187_p1), %s2126_s6, 256, %s2124_s10, %s2128_s9, %s1805_s25, %s1805_s25, %s1806_s26  }
 0x407 PF: > { %p1590_p4 = scmp.ge.s32.totalorder %s1792_s21, 2  ;;  %s1034_s30 = sand.u32 1, %s1780_s18  }
 0x408   : > { %p2188_p7 = scmp.ne.s32.totalorder %s2179_s29, 0  ;;  %s1035_s8 = scalar_lea.sflag [#allocation4], %s1034_s30 }
 0x40a   : > { %p1583_p8 = pnand %p1590_p4, %p2188_p7 }
 0x40c   : > { %1775 = dma.done.wait (!%p1583_p8), %s1035_s8, 256  }
 0x40d   : > { %1777 = vsyncadd (!%p1583_p8), %s1035_s8, 4294967040  ;;  %p17_p11 = scmp.ge.s32.totalorder %s1862_s24, 4   ;;  %s2189_s18 = smov %s1784_s19 }
 0x40e   : > { %s2190_s19 = smov %s1788_s20  ;;  %s2191_s20 = smov %s1873_s27 }
 0x40f   : > { %s2192_s21 = smov %s1862_s24  ;;  %19 = sbr.rel (!%p17_p11) target bundleno = 5 (0x5), region = 84 }
 0x416   :  { %1040 = vsyncpa [#allocation3], 1 }
 0x417   :  { %1042 = vsyncpa [#allocation3 + $0x1], 1 }
 0x418   :  { %1043 = vsyncpa [#allocation6], 1 }
 0x419   :  { %1044 = vsyncpa [#allocation4], 1 }
 0x41a   :  { %1046 = vsyncpa [#allocation4 + $0x1], 1 }

</bundles_post_ra>
